<compile_context>
chip_gen: v7x
topology: tpu7x:2x2x1
jax: 0.10.0
libtpu: 0.0.40
codegen_flags: <defaults>
</compile_context>

<pallas_src>
import jax
import jax.numpy as jnp
from jax.experimental import pallas as pl
from jax.experimental.pallas import tpu as pltpu

LAYER_DIMS = [4, 64, 128, 256, 128, 64]  # layer1..layer5 chain; layer6 -> output_dim
LANES = 128
IN_PAD = 8  # layer-1 K padded 4 -> 8 (one small MXU matmul instead of VPU loop)


def _mlp_kernel(x_ref,
                w1, b1, w2, b2, w3, b3, w4, b4, w5, b5, w6, b6,
                out_ref):
    x = x_ref[...]                                   # (TB, 8) f32

    # ---- layer 1: tiny f32 MXU matmul (K=8 after padding) ----
    h = jnp.dot(x, w1[...], preferred_element_type=jnp.float32) + b1[...]
    h = jnp.maximum(h, 0.0)

    # ---- layers 2..5: MXU matmuls in compute dtype, f32 accumulate,
    #      bias-add / ReLU in f32 (works on v5e where the VPU has no bf16) ----
    cd = w2.dtype
    for w, b in ((w2, b2), (w3, b3), (w4, b4), (w5, b5)):
        h = jnp.dot(h.astype(cd), w[...], preferred_element_type=jnp.float32) + b[...]
        h = jnp.maximum(h, 0.0)

    # ---- layer 6: padded-to-128-lane matmul; store only the requested cols ----
    out = jnp.dot(h.astype(cd), w6[...], preferred_element_type=jnp.float32) + b6[...]
    od = out_ref.shape[1]
    out_ref[...] = out[:, :od]


def _choose_tb(batch, block_batch):
    """Largest batch tile <= block_batch (multiple of 8) minimizing tail padding."""
    bb = max(8, (block_batch // 8) * 8)
    rb = ((batch + 7) // 8) * 8
    if rb <= bb:
        return rb                      # single tile, minimal padding
    best_tb, best_pad = bb, (-batch) % bb
    tb = bb - 8
    while tb > bb // 2:
        pad = (-batch) % tb
        if pad < best_pad:
            best_tb, best_pad = tb, pad
            if pad == 0:
                break
        tb -= 8
    return best_tb


def mlp_forward(obs, params, *, block_batch=1024, compute_dtype=jnp.bfloat16,
                lane_dense_output=False):
    """obs: (B, 4) float32.  params: list of (w, b) with w (in, out), b (1, out).

    compute_dtype applies to layers 2..6 (f32 accumulation); layer 1 stays f32.
    lane_dense_output=True returns/stores a 128-lane padded output instead of
    the narrow (B, out_dim) writeback.
    """
    obs = jnp.asarray(obs, jnp.float32)
    batch, in_dim = obs.shape
    out_dim = params[-1][0].shape[1]
    out_pad = ((out_dim + LANES - 1) // LANES) * LANES

    # Batch tile / tail padding.
    tb = _choose_tb(batch, block_batch)
    batch_p = ((batch + tb - 1) // tb) * tb

    # Pad obs: ragged batch tail + layer-1 K padded 4 -> IN_PAD with zeros.
    pad_rows = batch_p - batch
    pad_cols = IN_PAD - in_dim
    if pad_rows or pad_cols:
        obs = jnp.pad(obs, ((0, pad_rows), (0, pad_cols)))

    # Flatten params. Layer 1 stays f32 (W padded 4->IN_PAD rows with zeros);
    # layers 2..6 weights cast to compute_dtype; biases stay f32; the last
    # layer's W/b are zero-padded to out_pad lanes for an unmasked MXU output.
    flat = []
    n_layers = len(params)
    for li, (w, b) in enumerate(params):
        w = jnp.asarray(w, jnp.float32)
        b = jnp.asarray(b, jnp.float32).reshape(1, -1)
        if li == 0 and pad_cols:
            w = jnp.pad(w, ((0, pad_cols), (0, 0)))
        if li == n_layers - 1 and out_pad != out_dim:
            w = jnp.pad(w, ((0, 0), (0, out_pad - out_dim)))
            b = jnp.pad(b, ((0, 0), (0, out_pad - out_dim)))
        if li > 0:
            w = w.astype(compute_dtype)
        flat.extend([w, b])

    # Weights/biases: full-array blocks, constant index maps -> VMEM resident,
    # never re-DMA'd across grid steps (~330 KB f32 / ~180 KB bf16 total).
    param_specs = [pl.BlockSpec(p.shape, lambda i: (0, 0)) for p in flat]

    out_cols = out_pad if lane_dense_output else out_dim

    out = pl.pallas_call(
        _mlp_kernel,
        out_shape=jax.ShapeDtypeStruct((batch_p, out_cols), jnp.float32),
        grid=(batch_p // tb,),
        in_specs=[pl.BlockSpec((tb, IN_PAD), lambda i: (i, 0))] + param_specs,
        out_specs=pl.BlockSpec((tb, out_cols), lambda i: (i, 0)),
        compiler_params=pltpu.CompilerParams(
            dimension_semantics=("parallel",),
            vmem_limit_bytes=32 * 1024 * 1024),
    )(obs, *flat)

    if pad_rows:
        out = out[:batch]
    if lane_dense_output and out_pad != out_dim:
        # Caller asked for the padded buffer; slice at the point of use instead.
        return out
    return out


def init_params(key, output_dim):
    """Matches PyTorch nn.Linear default init: U(-1/sqrt(fan_in), +1/sqrt(fan_in))."""
    dims = LAYER_DIMS + [output_dim]
    params = []
    for i in range(len(dims) - 1):
        fan_in, fan_out = dims[i], dims[i + 1]
        key, kw, kb = jax.random.split(key, 3)
        bound = 1.0 / (fan_in ** 0.5)
        w = jax.random.uniform(kw, (fan_in, fan_out), jnp.float32, -bound, bound)
        b = jax.random.uniform(kb, (1, fan_out), jnp.float32, -bound, bound)
        params.append((w, b))
    return params


def mlp_reference(obs, params):
    h = obs
    for i, (w, b) in enumerate(params):
        h = h @ w + b
        if i < len(params) - 1:
            h = jnp.maximum(h, 0.0)
    return h


if __name__ == "__main__":
    key = jax.random.PRNGKey(0)
    output_dim = 2

    kp, kx1, kx2 = jax.random.split(key, 3)
    params = init_params(kp, output_dim)

    # Small aligned batch.
    obs = jax.random.normal(kx1, (8, 4), dtype=jnp.float32)
    ref = mlp_reference(obs, params)

    # f32 MXU path: tight tolerance vs reference.
    out_f32 = mlp_forward(obs, params, compute_dtype=jnp.float32)
    jax.block_until_ready(out_f32)
    assert out_f32.shape == (8, output_dim), out_f32.shape
    assert jnp.allclose(out_f32, ref, atol=1e-4, rtol=1e-4), \
        float(jnp.max(jnp.abs(out_f32 - ref)))

    # Default bf16 MXU path (f32 accumulation): looser tolerance.
    out_bf16 = mlp_forward(obs, params)
    jax.block_until_ready(out_bf16)
    assert out_bf16.shape == (8, output_dim), out_bf16.shape
    assert jnp.allclose(out_bf16, ref, atol=5e-2, rtol=5e-2), \
        float(jnp.max(jnp.abs(out_bf16 - ref)))

    # Ragged batch exercising tail padding + tb selection.
    obs2 = jax.random.normal(kx2, (13, 4), dtype=jnp.float32)
    ref2 = mlp_reference(obs2, params)
    out2 = mlp_forward(obs2, params, compute_dtype=jnp.float32)
    jax.block_until_ready(out2)
    assert out2.shape == (13, output_dim), out2.shape
    assert jnp.allclose(out2, ref2, atol=1e-4, rtol=1e-4), \
        float(jnp.max(jnp.abs(out2 - ref2)))

    print("KERNEL_OK")
</pallas_src>

<mosaic_0001>
module attributes {stable_mosaic.version = 11 : i64} {
  func.func @_mlp_kernel(%arg0: i32, %arg1: memref<8x8xf32, #tpu.memory_space<vmem>>, %arg2: memref<8x64xf32, #tpu.memory_space<vmem>>, %arg3: memref<1x64xf32, #tpu.memory_space<vmem>>, %arg4: memref<64x128xf32, #tpu.memory_space<vmem>>, %arg5: memref<1x128xf32, #tpu.memory_space<vmem>>, %arg6: memref<128x256xf32, #tpu.memory_space<vmem>>, %arg7: memref<1x256xf32, #tpu.memory_space<vmem>>, %arg8: memref<256x128xf32, #tpu.memory_space<vmem>>, %arg9: memref<1x128xf32, #tpu.memory_space<vmem>>, %arg10: memref<128x64xf32, #tpu.memory_space<vmem>>, %arg11: memref<1x64xf32, #tpu.memory_space<vmem>>, %arg12: memref<64x128xf32, #tpu.memory_space<vmem>>, %arg13: memref<1x128xf32, #tpu.memory_space<vmem>>, %arg14: memref<8x2xf32, #tpu.memory_space<vmem>>) attributes {dimension_semantics = [#tpu.dimension_semantics<parallel>], iteration_bounds = array<i64: 1>, scalar_prefetch = 0 : i64, scratch_operands = 0 : i64, tpu.core_type = #tpu.core_type<tc>, window_params = [{transform_indices = @transform_0, window_bounds = array<i64: 8, 8>}, {pipeline_mode = #tpu.pipeline_mode<synchronous>, transform_indices = @transform_1, window_bounds = array<i64: 8, 64>}, {pipeline_mode = #tpu.pipeline_mode<synchronous>, transform_indices = @transform_2, window_bounds = array<i64: 1, 64>}, {pipeline_mode = #tpu.pipeline_mode<synchronous>, transform_indices = @transform_3, window_bounds = array<i64: 64, 128>}, {pipeline_mode = #tpu.pipeline_mode<synchronous>, transform_indices = @transform_4, window_bounds = array<i64: 1, 128>}, {pipeline_mode = #tpu.pipeline_mode<synchronous>, transform_indices = @transform_5, window_bounds = array<i64: 128, 256>}, {pipeline_mode = #tpu.pipeline_mode<synchronous>, transform_indices = @transform_6, window_bounds = array<i64: 1, 256>}, {pipeline_mode = #tpu.pipeline_mode<synchronous>, transform_indices = @transform_7, window_bounds = array<i64: 256, 128>}, {pipeline_mode = #tpu.pipeline_mode<synchronous>, transform_indices = @transform_8, window_bounds = array<i64: 1, 128>}, {pipeline_mode = #tpu.pipeline_mode<synchronous>, transform_indices = @transform_9, window_bounds = array<i64: 128, 64>}, {pipeline_mode = #tpu.pipeline_mode<synchronous>, transform_indices = @transform_10, window_bounds = array<i64: 1, 64>}, {pipeline_mode = #tpu.pipeline_mode<synchronous>, transform_indices = @transform_11, window_bounds = array<i64: 64, 128>}, {pipeline_mode = #tpu.pipeline_mode<synchronous>, transform_indices = @transform_12, window_bounds = array<i64: 1, 128>}, {transform_indices = @transform_13, window_bounds = array<i64: 8, 2>}]} {
    %c0 = arith.constant 0 : index
    %c0_0 = arith.constant 0 : index
    %0 = vector.load %arg1[%c0, %c0_0] : memref<8x8xf32, #tpu.memory_space<vmem>>, vector<8x8xf32>
    %c0_1 = arith.constant 0 : index
    %c0_2 = arith.constant 0 : index
    %1 = vector.load %arg2[%c0_1, %c0_2] : memref<8x64xf32, #tpu.memory_space<vmem>>, vector<8x64xf32>
    %cst = arith.constant dense<0.000000e+00> : vector<8x64xf32>
    %2 = tpu.matmul %0, %1, %cst {dimension_numbers = #tpu.dot_dimension_numbers<[1], [0], [0], [1], [0, 0, 1, 1], [], []>} : vector<8x8xf32>, vector<8x64xf32>, vector<8x64xf32> -> vector<8x64xf32>
    %c0_3 = arith.constant 0 : index
    %c0_4 = arith.constant 0 : index
    %3 = vector.load %arg3[%c0_3, %c0_4] : memref<1x64xf32, #tpu.memory_space<vmem>>, vector<1x64xf32>
    %4 = vector.broadcast %3 : vector<1x64xf32> to vector<8x64xf32>
    %5 = arith.addf %2, %4 : vector<8x64xf32>
    %cst_5 = arith.constant 0.000000e+00 : f32
    %6 = vector.broadcast %cst_5 : f32 to vector<8x64xf32>
    %7 = arith.maximumf %5, %6 : vector<8x64xf32>
    %c0_6 = arith.constant 0 : index
    %c0_7 = arith.constant 0 : index
    %8 = vector.load %arg4[%c0_6, %c0_7] : memref<64x128xf32, #tpu.memory_space<vmem>>, vector<64x128xf32>
    %cst_8 = arith.constant dense<0.000000e+00> : vector<8x128xf32>
    %9 = tpu.matmul %7, %8, %cst_8 {dimension_numbers = #tpu.dot_dimension_numbers<[1], [0], [0], [1], [0, 0, 1, 1], [], []>} : vector<8x64xf32>, vector<64x128xf32>, vector<8x128xf32> -> vector<8x128xf32>
    %c0_9 = arith.constant 0 : index
    %c0_10 = arith.constant 0 : index
    %10 = vector.load %arg5[%c0_9, %c0_10] : memref<1x128xf32, #tpu.memory_space<vmem>>, vector<1x128xf32>
    %11 = vector.broadcast %10 : vector<1x128xf32> to vector<8x128xf32>
    %12 = arith.addf %9, %11 : vector<8x128xf32>
    %cst_11 = arith.constant 0.000000e+00 : f32
    %13 = vector.broadcast %cst_11 : f32 to vector<8x128xf32>
    %14 = arith.maximumf %12, %13 : vector<8x128xf32>
    %c0_12 = arith.constant 0 : index
    %c0_13 = arith.constant 0 : index
    %15 = vector.load %arg6[%c0_12, %c0_13] : memref<128x256xf32, #tpu.memory_space<vmem>>, vector<128x256xf32>
    %cst_14 = arith.constant dense<0.000000e+00> : vector<8x256xf32>
    %16 = tpu.matmul %14, %15, %cst_14 {dimension_numbers = #tpu.dot_dimension_numbers<[1], [0], [0], [1], [0, 0, 1, 1], [], []>} : vector<8x128xf32>, vector<128x256xf32>, vector<8x256xf32> -> vector<8x256xf32>
    %c0_15 = arith.constant 0 : index
    %c0_16 = arith.constant 0 : index
    %17 = vector.load %arg7[%c0_15, %c0_16] : memref<1x256xf32, #tpu.memory_space<vmem>>, vector<1x256xf32>
    %18 = vector.broadcast %17 : vector<1x256xf32> to vector<8x256xf32>
    %19 = arith.addf %16, %18 : vector<8x256xf32>
    %cst_17 = arith.constant 0.000000e+00 : f32
    %20 = vector.broadcast %cst_17 : f32 to vector<8x256xf32>
    %21 = arith.maximumf %19, %20 : vector<8x256xf32>
    %c0_18 = arith.constant 0 : index
    %c0_19 = arith.constant 0 : index
    %22 = vector.load %arg8[%c0_18, %c0_19] : memref<256x128xf32, #tpu.memory_space<vmem>>, vector<256x128xf32>
    %cst_20 = arith.constant dense<0.000000e+00> : vector<8x128xf32>
    %23 = tpu.matmul %21, %22, %cst_20 {dimension_numbers = #tpu.dot_dimension_numbers<[1], [0], [0], [1], [0, 0, 1, 1], [], []>} : vector<8x256xf32>, vector<256x128xf32>, vector<8x128xf32> -> vector<8x128xf32>
    %c0_21 = arith.constant 0 : index
    %c0_22 = arith.constant 0 : index
    %24 = vector.load %arg9[%c0_21, %c0_22] : memref<1x128xf32, #tpu.memory_space<vmem>>, vector<1x128xf32>
    %25 = vector.broadcast %24 : vector<1x128xf32> to vector<8x128xf32>
    %26 = arith.addf %23, %25 : vector<8x128xf32>
    %cst_23 = arith.constant 0.000000e+00 : f32
    %27 = vector.broadcast %cst_23 : f32 to vector<8x128xf32>
    %28 = arith.maximumf %26, %27 : vector<8x128xf32>
    %c0_24 = arith.constant 0 : index
    %c0_25 = arith.constant 0 : index
    %29 = vector.load %arg10[%c0_24, %c0_25] : memref<128x64xf32, #tpu.memory_space<vmem>>, vector<128x64xf32>
    %cst_26 = arith.constant dense<0.000000e+00> : vector<8x64xf32>
    %30 = tpu.matmul %28, %29, %cst_26 {dimension_numbers = #tpu.dot_dimension_numbers<[1], [0], [0], [1], [0, 0, 1, 1], [], []>} : vector<8x128xf32>, vector<128x64xf32>, vector<8x64xf32> -> vector<8x64xf32>
    %c0_27 = arith.constant 0 : index
    %c0_28 = arith.constant 0 : index
    %31 = vector.load %arg11[%c0_27, %c0_28] : memref<1x64xf32, #tpu.memory_space<vmem>>, vector<1x64xf32>
    %32 = vector.broadcast %31 : vector<1x64xf32> to vector<8x64xf32>
    %33 = arith.addf %30, %32 : vector<8x64xf32>
    %cst_29 = arith.constant 0.000000e+00 : f32
    %34 = vector.broadcast %cst_29 : f32 to vector<8x64xf32>
    %35 = arith.maximumf %33, %34 : vector<8x64xf32>
    %c0_30 = arith.constant 0 : index
    %c0_31 = arith.constant 0 : index
    %36 = vector.load %arg12[%c0_30, %c0_31] : memref<64x128xf32, #tpu.memory_space<vmem>>, vector<64x128xf32>
    %cst_32 = arith.constant dense<0.000000e+00> : vector<8x128xf32>
    %37 = tpu.matmul %35, %36, %cst_32 {dimension_numbers = #tpu.dot_dimension_numbers<[1], [0], [0], [1], [0, 0, 1, 1], [], []>} : vector<8x64xf32>, vector<64x128xf32>, vector<8x128xf32> -> vector<8x128xf32>
    %c0_33 = arith.constant 0 : index
    %c0_34 = arith.constant 0 : index
    %38 = vector.load %arg13[%c0_33, %c0_34] : memref<1x128xf32, #tpu.memory_space<vmem>>, vector<1x128xf32>
    %39 = vector.broadcast %38 : vector<1x128xf32> to vector<8x128xf32>
    %40 = arith.addf %37, %39 : vector<8x128xf32>
    %41 = vector.extract_strided_slice %40 {offsets = [0, 0], sizes = [8, 2], strides = [1, 1]} : vector<8x128xf32> to vector<8x2xf32>
    %c0_35 = arith.constant 0 : index
    %c0_36 = arith.constant 0 : index
    %42 = vector.load %arg14[%c0_35, %c0_36] : memref<8x2xf32, #tpu.memory_space<vmem>>, vector<8x2xf32>
    tpu.vector_store %arg14[%c0_35, %c0_36], %41 {strides = array<i32>} : memref<8x2xf32, #tpu.memory_space<vmem>>, vector<8x2xf32>,
    return
  }
  func.func @transform_0(%arg0: i32) -> (i32, i32) {
    %c0_i32 = arith.constant 0 : i32
    %c0_i32_0 = arith.constant 0 : i32
    return %arg0, %c0_i32 : i32, i32
  }
  func.func @transform_1(%arg0: i32) -> (i32, i32) {
    %c0_i32 = arith.constant 0 : i32
    %c0_i32_0 = arith.constant 0 : i32
    %c0_i32_1 = arith.constant 0 : i32
    return %c0_i32, %c0_i32_0 : i32, i32
  }
  func.func @transform_2(%arg0: i32) -> (i32, i32) {
    %c0_i32 = arith.constant 0 : i32
    %c0_i32_0 = arith.constant 0 : i32
    %c0_i32_1 = arith.constant 0 : i32
    return %c0_i32, %c0_i32_0 : i32, i32
  }
  func.func @transform_3(%arg0: i32) -> (i32, i32) {
    %c0_i32 = arith.constant 0 : i32
    %c0_i32_0 = arith.constant 0 : i32
    %c0_i32_1 = arith.constant 0 : i32
    return %c0_i32, %c0_i32_0 : i32, i32
  }
  func.func @transform_4(%arg0: i32) -> (i32, i32) {
    %c0_i32 = arith.constant 0 : i32
    %c0_i32_0 = arith.constant 0 : i32
    %c0_i32_1 = arith.constant 0 : i32
    return %c0_i32, %c0_i32_0 : i32, i32
  }
  func.func @transform_5(%arg0: i32) -> (i32, i32) {
    %c0_i32 = arith.constant 0 : i32
    %c0_i32_0 = arith.constant 0 : i32
    %c0_i32_1 = arith.constant 0 : i32
    return %c0_i32, %c0_i32_0 : i32, i32
  }
  func.func @transform_6(%arg0: i32) -> (i32, i32) {
    %c0_i32 = arith.constant 0 : i32
    %c0_i32_0 = arith.constant 0 : i32
    %c0_i32_1 = arith.constant 0 : i32
    return %c0_i32, %c0_i32_0 : i32, i32
  }
  func.func @transform_7(%arg0: i32) -> (i32, i32) {
    %c0_i32 = arith.constant 0 : i32
    %c0_i32_0 = arith.constant 0 : i32
    %c0_i32_1 = arith.constant 0 : i32
    return %c0_i32, %c0_i32_0 : i32, i32
  }
  func.func @transform_8(%arg0: i32) -> (i32, i32) {
    %c0_i32 = arith.constant 0 : i32
    %c0_i32_0 = arith.constant 0 : i32
    %c0_i32_1 = arith.constant 0 : i32
    return %c0_i32, %c0_i32_0 : i32, i32
  }
  func.func @transform_9(%arg0: i32) -> (i32, i32) {
    %c0_i32 = arith.constant 0 : i32
    %c0_i32_0 = arith.constant 0 : i32
    %c0_i32_1 = arith.constant 0 : i32
    return %c0_i32, %c0_i32_0 : i32, i32
  }
  func.func @transform_10(%arg0: i32) -> (i32, i32) {
    %c0_i32 = arith.constant 0 : i32
    %c0_i32_0 = arith.constant 0 : i32
    %c0_i32_1 = arith.constant 0 : i32
    return %c0_i32, %c0_i32_0 : i32, i32
  }
  func.func @transform_11(%arg0: i32) -> (i32, i32) {
    %c0_i32 = arith.constant 0 : i32
    %c0_i32_0 = arith.constant 0 : i32
    %c0_i32_1 = arith.constant 0 : i32
    return %c0_i32, %c0_i32_0 : i32, i32
  }
  func.func @transform_12(%arg0: i32) -> (i32, i32) {
    %c0_i32 = arith.constant 0 : i32
    %c0_i32_0 = arith.constant 0 : i32
    %c0_i32_1 = arith.constant 0 : i32
    return %c0_i32, %c0_i32_0 : i32, i32
  }
  func.func @transform_13(%arg0: i32) -> (i32, i32) {
    %c0_i32 = arith.constant 0 : i32
    %c0_i32_0 = arith.constant 0 : i32
    return %arg0, %c0_i32 : i32, i32
  }
}

</mosaic_0001>

<bundles_post_ra>
// kernel: tpu_custom_call.1
= control target key start
LH: loop header
LB: loop body
LE: loop exit
PB: predicated region body
PF: predicated region fallthrough
CT: control target
= control target key end

     0   :  { %18 = vsyncpa [#allocation3], 0  ;;  %s1244_s0 = inlined_call_operand.vmem [shape: f32[8,8], index: 0, kind: input, shape index: {}]   ;;  %s1245_s1 = inlined_call_operand.vmem [shape: f32[8,64], index: 1, kind: input, shape index: {}]   ;;  %s1246_s2 = inlined_call_operand.vmem [shape: f32[1,64], index: 2, kind: input, shape index: {}]   ;;  %s1247_s3 = inlined_call_operand.vmem [shape: f32[64,128], index: 3, kind: input, shape index: {}]   ;;  %s1248_s4 = inlined_call_operand.vmem [shape: f32[1,128], index: 4, kind: input, shape index: {}]   ;;  %s1249_s5 = inlined_call_operand.hbm [shape: f32[128,256], index: 5, kind: input, shape index: {}]   ;;  %s1250_s6 = inlined_call_operand.vmem [shape: f32[1,256], index: 6, kind: input, shape index: {}]   ;;  %s1251_s7 = inlined_call_operand.hbm [shape: f32[256,128], index: 7, kind: input, shape index: {}]   ;;  %s1252_s8 = inlined_call_operand.vmem [shape: f32[1,128], index: 8, kind: input, shape index: {}]   ;;  %s1253_s9 = inlined_call_operand.vmem [shape: f32[128,64], index: 9, kind: input, shape index: {}]   ;;  %s1254_s10 = inlined_call_operand.vmem [shape: f32[1,64], index: 10, kind: input, shape index: {}]   ;;  %s1255_s11 = inlined_call_operand.vmem [shape: f32[64,128], index: 11, kind: input, shape index: {}]   ;;  %s1256_s12 = inlined_call_operand.vmem [shape: f32[1,128], index: 12, kind: input, shape index: {}]   ;;  %s1257_s13 = inlined_call_operand.vmem [shape: f32[8,2], index: 13, kind: output, shape index: {}]  }
   0x1   :  { %19 = vsyncpa [#allocation5], 0  ;;  %s990_s25 = smov [#allocation2]   ;;  %s942_s29 = scalar_lea.hbm %s1249_s5, 4096 }
   0x2   :  { %s35_s26 = sshll.u32 %s990_s25, 4  ;;  %p943_p0 = scmp.ne.s32.totalorder %s1249_s5, %s942_s29  ;;  %s36_s26 = int_to_ptr.vmem [resolvable:$true] %s35_s26 }
   0x3   :  { %p946_p1 = scmp.lt.u32.totalorder %s942_s29, %s1249_s5 }
   0x5   :  { %p948_p2 = pnand %p946_p1, %p943_p0 }
   0x7   :  { %951 = shalt.err (!%p948_p2)
}
   0x8   :  { %s952_s17 = scalar_lea.vmem %s36_s26, 4096  ;;  %p957_p4 = scmp.lt.s32.totalorder %s36_s26, %s36_s26 }
   0x9   :  { %p953_p3 = scmp.ne.s32.totalorder %s36_s26, %s952_s17  ;;  %p958_p5 = scmp.lt.s32.totalorder %s952_s17, %s952_s17 }
   0xb   :  { %p959_p6 = por %p958_p5, %p957_p4 }
   0xd   :  { %p960_p7 = pnand %p959_p6, %p953_p3 }
   0xf   :  { %963 = shalt.err (!%p960_p7)
}
  0x10   :  { %s991_s18 = smov 256   ;;  %s992_s19 = smov 16  }
  0x11   :  { %41 = dma.hbm_to_vmem [thread:$0]  %s1249_s5, 4096, %s36_s26, [#allocation3], %s991_s18, %s991_s18, %s992_s19  }
  0x12   :  { %s993_s22 = smov [#allocation4]   ;;  %s964_s27 = scalar_lea.hbm %s1251_s7, 4096 }
  0x13   :  { %s49_s23 = sshll.u32 %s993_s22, 4  ;;  %p965_p8 = scmp.ne.s32.totalorder %s1251_s7, %s964_s27  ;;  %s50_s23 = int_to_ptr.vmem [resolvable:$true] %s49_s23 }
  0x14   :  { %p968_p9 = scmp.lt.u32.totalorder %s964_s27, %s1251_s7 }
  0x16   :  { %p970_p10 = pnand %p968_p9, %p965_p8 }
  0x18   :  { %973 = shalt.err (!%p970_p10)
}
  0x19   :  { %s974_s15 = scalar_lea.vmem %s50_s23, 4096  ;;  %p979_p12 = scmp.lt.s32.totalorder %s50_s23, %s50_s23 }
  0x1a   :  { %p975_p11 = scmp.ne.s32.totalorder %s50_s23, %s974_s15  ;;  %p980_p13 = scmp.lt.s32.totalorder %s974_s15, %s974_s15 }
  0x1c   :  { %p981_p0 = por %p980_p13, %p979_p12 }
  0x1e   :  { %p982_p1 = pnand %p981_p0, %p975_p11 }
  0x20   :  { %985 = shalt.err (!%p982_p1)
}
  0x21   :  { %s994_s5 = smov 128   ;;  %s995_s26 = smov 8  }
  0x22   :  { %55 = dma.hbm_to_vmem [thread:$0]  %s1251_s7, 4096, %s50_s23, [#allocation5], %s994_s5, %s994_s5, %s995_s26  }
  0x23   :  { %986 = dma.done.wait [#allocation3], 4096  }
  0x24   :  { %987 = vsyncadd [#allocation3], 4294963200 }
  0x25   :  { %988 = dma.done.wait [#allocation5], 4096  }
  0x26   :  { %989 = vsyncadd [#allocation5], 4294963200  ;;  %v996_v0 = vmov 0.0   ;;  %vm997_vm0 = vmmov 0   ;;  %v998_v1 = vmov 0.0|0.0   ;;  %vm81_vm1 = vcmask 64512  }
  0x27   :  { %743 = vmatprep.subr.mxu0 %v996_v0  ;;  %745 = vmatprep.mubr.msk.f32.mxu0 %vm997_vm0, %v996_v0  ;;  %v73_v2 = vld [vmem:[%s1245_s1] sm:$0xff]  ;;  %v157_v5 = vld [vmem:[%s1247_s3 + $0x8] sm:$0xff]  ;;  %v158_v6 = vld [vmem:[%s1247_s3 + $0x10] sm:$0xff]  ;;  %vm171_vm2 = vcmask 523264   ;;  %vm655_vm3 = vcmask 15360  }
  0x28   :  { %821 = vmatprep.subr.bf16.mxu1 %v998_v1  ;;  %764 = vmatprep.mubr.msk.f32.mxu1 %vm997_vm0, %v996_v0  ;;  %v72_v3 = vld [vmem:[%s1244_s0] sm:$0xff]  ;;  %v159_v7 = vld [vmem:[%s1247_s3 + $0x18] sm:$0xff]  ;;  %v161_v11 = vld [vmem:[%s1247_s3 + $0x28] sm:$0xff] }
  0x29   :  { %v156_v4 = vld [vmem:[%s1247_s3] sm:$0xff]  ;;  %744 = vmatpush3.msra.mxu0 %v73_v2  ;;  %v825_v9 = vpack.c.bf16 %v159_v7, %v158_v6  ;;  %v162_v13 = vld [vmem:[%s1247_s3 + $0x30] sm:$0xff]  ;;  %v163_v14 = vld [vmem:[%s1247_s3 + $0x38] sm:$0xff] }
  0x2a   :  { %746 = vmatmul.mubr.msk.f32.vlgmr.msra.gmra.mrb[0].mxu0 %vm81_vm1, %v72_v3  ;;  %v822_v8 = vpack.c.bf16 %v157_v5, %v156_v4  ;;  %v160_v10 = vld [vmem:[%s1247_s3 + $0x20] sm:$0xff]  ;;  %v831_v15 = vpack.c.bf16 %v163_v14, %v162_v13  ;;  %v247_v16 = vld [vmem:[#allocation2 + $0x8] sm:$0xff]  ;;  %v249_v17 = vld [vmem:[#allocation2 + $0x18] sm:$0xff] }
  0x2b   :  { %354 = vmatprep.mubr.f32.mxu0 %v996_v0  ;;  %v828_v12 = vpack.c.bf16 %v161_v11, %v160_v10  ;;  %v246_v18 = vld [vmem:[#allocation2] sm:$0xff]  ;;  %v833_v19 = vpack.c.bf16 %v249_v17, %v247_v16  ;;  %v248_v20 = vld [vmem:[#allocation2 + $0x10] sm:$0xff]  ;;  %v251_v21 = vld [vmem:[#allocation2 + $0x28] sm:$0xff] }
  0x2c   :  { %823 = vmatpush3.bf16.msra.mxu1 %v822_v8  ;;  %v253_v22 = vld [vmem:[#allocation2 + $0x38] sm:$0xff]  ;;  %v835_v23 = vpack.c.bf16 %v248_v20, %v246_v18  ;;  %v250_v25 = vld [vmem:[#allocation2 + $0x20] sm:$0xff]  ;;  %v252_v26 = vld [vmem:[#allocation2 + $0x30] sm:$0xff] }
  0x2d   :  { %824 = vmatprep.subr.bf16.mxu1 %v998_v1  ;;  %v837_v24 = vpack.c.bf16 %v253_v22, %v251_v21  ;;  %v255_v27 = vld [vmem:[#allocation2 + $0x48] sm:$0xff]  ;;  %834 = vmatprep.subr.bf16.mxu0 %v833_v19  ;;  %v257_v28 = vld [vmem:[#allocation2 + $0x58] sm:$0xff]  ;;  %v839_v29 = vpack.c.bf16 %v252_v26, %v250_v25  ;;  %v254_v31 = vld [vmem:[#allocation2 + $0x40] sm:$0xff] }
  0x2e   :  { %836 = vmatpush1.bf16.msra.mxu0 %v835_v23  ;;  %v841_v30 = vpack.c.bf16 %v257_v28, %v255_v27  ;;  %v256_v32 = vld [vmem:[#allocation2 + $0x50] sm:$0xff]  ;;  %v259_v33 = vld [vmem:[#allocation2 + $0x68] sm:$0xff]  ;;  %v261_v34 = vld [vmem:[#allocation2 + $0x78] sm:$0xff] }
  0x2f   :  { %838 = vmatprep.subr.bf16.mxu0 %v837_v24  ;;  %v843_v35 = vpack.c.bf16 %v256_v32, %v254_v31  ;;  %v845_v36 = vpack.c.bf16 %v261_v34, %v259_v33  ;;  %v258_v37 = vld [vmem:[#allocation2 + $0x60] sm:$0xff]  ;;  %v260_v38 = vld [vmem:[#allocation2 + $0x70] sm:$0xff]  ;;  %v263_v39 = vld [vmem:[#allocation2 + $0x88] sm:$0xff] }
  0x30   :  { %826 = vmatpush3.bf16.msra.mxu1 %v825_v9  ;;  %v265_v40 = vld [vmem:[#allocation2 + $0x98] sm:$0xff]  ;;  %v847_v41 = vpack.c.bf16 %v260_v38, %v258_v37  ;;  %v262_v43 = vld [vmem:[#allocation2 + $0x80] sm:$0xff]  ;;  %v264_v44 = vld [vmem:[#allocation2 + $0x90] sm:$0xff] }
  0x31   :  { %827 = vmatprep.subr.bf16.mxu1 %v998_v1  ;;  %v849_v42 = vpack.c.bf16 %v265_v40, %v263_v39  ;;  %v267_v45 = vld [vmem:[#allocation2 + $0xa8] sm:$0xff]  ;;  %v269_v46 = vld [vmem:[#allocation2 + $0xb8] sm:$0xff]  ;;  %v851_v47 = vpack.c.bf16 %v264_v44, %v262_v43  ;;  %v266_v49 = vld [vmem:[#allocation2 + $0xa0] sm:$0xff] }
  0x32   :  { %840 = vmatpush1.bf16.msra.mxu0 %v839_v29  ;;  %v853_v48 = vpack.c.bf16 %v269_v46, %v267_v45  ;;  %v268_v50 = vld [vmem:[#allocation2 + $0xb0] sm:$0xff]  ;;  %v271_v51 = vld [vmem:[#allocation2 + $0xc8] sm:$0xff]  ;;  %v273_v52 = vld [vmem:[#allocation2 + $0xd8] sm:$0xff] }
  0x33   :  { %842 = vmatprep.subr.bf16.mxu0 %v841_v30  ;;  %v855_v53 = vpack.c.bf16 %v268_v50, %v266_v49  ;;  %v857_v54 = vpack.c.bf16 %v273_v52, %v271_v51  ;;  %v270_v55 = vld [vmem:[#allocation2 + $0xc0] sm:$0xff]  ;;  %v272_v56 = vld [vmem:[#allocation2 + $0xd0] sm:$0xff]  ;;  %v275_v63 = vld [vmem:[#allocation2 + $0xe8] sm:$0xff] }
  0x34   :  { %829 = vmatpush3.bf16.msra.mxu1 %v828_v12  ;;  %v859_v57 = vpack.c.bf16 %v272_v56, %v270_v55  ;;  %v663_v58 = vld [vmem:[%s1246_s2] ss:$0 sm:$0xff]  ;;  %v277_v2 = vld [vmem:[#allocation2 + $0xf8] sm:$0xff]  ;;  %v276_v5 = vld [vmem:[#allocation2 + $0xf0] sm:$0xff] }
  0x35   :  { %830 = vmatprep.subr.bf16.mxu1 %v998_v1  ;;  %v861_v3 = vpack.c.bf16 %v277_v2, %v275_v63  ;;  %v274_v4 = vld [vmem:[#allocation2 + $0xe0] sm:$0xff]  ;;  %v380_v8 = vld [vmem:[#allocation4 + $0x88] sm:$0xff]  ;;  %v381_v12 = vld [vmem:[#allocation4 + $0x90] sm:$0xff] }
  0x36   :  { %844 = vmatpush1.bf16.msra.mxu0 %v843_v35  ;;  %v863_v6 = vpack.c.bf16 %v276_v5, %v274_v4  ;;  %v379_v7 = vld [vmem:[#allocation4 + $0x80] sm:$0xff]  ;;  %v364_v11 = vld [vmem:[#allocation4 + $0x8] sm:$0xff]  ;;  %v382_v13 = vld [vmem:[#allocation4 + $0x98] sm:$0xff] }
  0x37   :  { %846 = vmatprep.subr.bf16.mxu0 %v845_v36  ;;  %v363_v9 = vld [vmem:[#allocation4] sm:$0xff]  ;;  %v865_v10 = vpack.c.bf16 %v380_v8, %v379_v7  ;;  %v365_v16 = vld [vmem:[#allocation4 + $0x10] sm:$0xff]  ;;  %v366_v17 = vld [vmem:[#allocation4 + $0x18] sm:$0xff] }
  0x38   :  { %832 = vmatpush3.bf16.msra.mxu1 %v831_v15  ;;  %v867_v14 = vpack.c.bf16 %v364_v11, %v363_v9  ;;  %v869_v15 = vpack.c.bf16 %v382_v13, %v381_v12  ;;  %v383_v18 = vld [vmem:[#allocation4 + $0xa0] sm:$0xff]  ;;  %v384_v19 = vld [vmem:[#allocation4 + $0xa8] sm:$0xff]  ;;  %v871_v20 = vpack.c.bf16 %v366_v17, %v365_v16  ;;  %v385_v24 = vld [vmem:[#allocation4 + $0xb0] sm:$0xff]  ;;  %v280_v16 = vlaneseq }
  0x39   :  { %866 = vmatprep.subr.bf16.mxu1 %v865_v10  ;;  %v873_v21 = vpack.c.bf16 %v384_v19, %v383_v18  ;;  %v367_v22 = vld [vmem:[#allocation4 + $0x20] sm:$0xff]  ;;  %v368_v23 = vld [vmem:[#allocation4 + $0x28] sm:$0xff]  ;;  %v386_v25 = vld [vmem:[#allocation4 + $0xb8] sm:$0xff] }
  0x3a   :  { %848 = vmatpush1.bf16.msra.mxu0 %v847_v41  ;;  %v875_v26 = vpack.c.bf16 %v368_v23, %v367_v22  ;;  %v877_v27 = vpack.c.bf16 %v386_v25, %v385_v24  ;;  %v369_v28 = vld [vmem:[#allocation4 + $0x30] sm:$0xff]  ;;  %v370_v29 = vld [vmem:[#allocation4 + $0x38] sm:$0xff]  ;;  %v387_v30 = vld [vmem:[#allocation4 + $0xc0] sm:$0xff]  ;;  %v281_v17 = vshrl.u32 %v280_v16, 7 }
  0x3b   :  { %850 = vmatprep.subr.bf16.mxu0 %v849_v42  ;;  %v388_v31 = vld [vmem:[#allocation4 + $0xc8] sm:$0xff]  ;;  %v879_v32 = vpack.c.bf16 %v370_v29, %v369_v28  ;;  %v371_v34 = vld [vmem:[#allocation4 + $0x40] sm:$0xff]  ;;  %v389_v36 = vld [vmem:[#allocation4 + $0xd0] sm:$0xff] }
  0x3c   :  { %v881_v33 = vpack.c.bf16 %v388_v31, %v387_v30  ;;  %v372_v35 = vld [vmem:[#allocation4 + $0x48] sm:$0xff]  ;;  %v390_v37 = vld [vmem:[#allocation4 + $0xd8] sm:$0xff]  ;;  %v373_v40 = vld [vmem:[#allocation4 + $0x50] sm:$0xff]  ;;  %v282_v18 = vsub.s32 0, %v281_v17 }
  0x3d   :  { %v883_v38 = vpack.c.bf16 %v372_v35, %v371_v34  ;;  %v885_v39 = vpack.c.bf16 %v390_v37, %v389_v36  ;;  %v374_v41 = vld [vmem:[#allocation4 + $0x58] sm:$0xff]  ;;  %v391_v42 = vld [vmem:[#allocation4 + $0xe0] sm:$0xff]  ;;  %v392_v43 = vld [vmem:[#allocation4 + $0xe8] sm:$0xff] }
  0x3e   :  { %852 = vmatpush1.bf16.msra.mxu0 %v851_v47  ;;  %v887_v44 = vpack.c.bf16 %v374_v41, %v373_v40  ;;  %v889_v45 = vpack.c.bf16 %v392_v43, %v391_v42  ;;  %v665_v46 = vld [vmem:[%s1248_s4] ss:$0 sm:$0xff]  ;;  %v376_v52 = vld [vmem:[#allocation4 + $0x68] sm:$0xff]  ;;  %v394_v55 = vld [vmem:[#allocation4 + $0xf8] sm:$0xff] }
  0x3f   :  { %854 = vmatprep.subr.bf16.mxu0 %v853_v48  ;;  %v375_v51 = vld [vmem:[#allocation4 + $0x60] sm:$0xff]  ;;  %v476_v2 = vld [vmem:[%s1253_s9 + $0x18] sm:$0xff]  ;;  %v478_v5 = vld [vmem:[%s1253_s9 + $0x28] sm:$0xff] }
  0x40   :  { %v477_v4 = vld [vmem:[%s1253_s9 + $0x20] sm:$0xff]  ;;  %v479_v7 = vld [vmem:[%s1253_s9 + $0x30] sm:$0xff]  ;;  %v480_v8 = vld [vmem:[%s1253_s9 + $0x38] sm:$0xff] }
  0x41   :  { %v907_v9 = vpack.c.bf16 %v480_v8, %v479_v7  ;;  %v481_v10 = vld [vmem:[%s1253_s9 + $0x40] sm:$0xff]  ;;  %v482_v11 = vld [vmem:[%s1253_s9 + $0x48] sm:$0xff]  ;;  %v483_v13 = vld [vmem:[%s1253_s9 + $0x50] sm:$0xff] }
  0x42   :  { %856 = vmatpush1.bf16.msra.mxu0 %v855_v53  ;;  %v891_v53 = vpack.c.bf16 %v376_v52, %v375_v51  ;;  %v910_v12 = vpack.c.bf16 %v482_v11, %v481_v10  ;;  %v278_v19 = vld [vmem:[%s1250_s6] sm:$0x3]  ;;  %v486_v30 = vld [vmem:[%s1253_s9 + $0x68] sm:$0xff]  ;;  %v569_v36 = vld [vmem:[%s1255_s11 + $0x10] sm:$0xff] }
  0x43   :  { %858 = vmatprep.subr.bf16.mxu0 %v857_v54  ;;  %v393_v54 = vld [vmem:[#allocation4 + $0xf0] sm:$0xff]  ;;  %v485_v29 = vld [vmem:[%s1253_s9 + $0x60] sm:$0xff]  ;;  %v568_v35 = vld [vmem:[%s1255_s11 + $0x8] sm:$0xff] }
  0x44   :  { %v893_v56 = vpack.c.bf16 %v394_v55, %v393_v54  ;;  %v916_v31 = vpack.c.bf16 %v486_v30, %v485_v29  ;;  %v567_v34 = vld [vmem:[%s1255_s11] sm:$0xff]  ;;  %v572_v41 = vld [vmem:[%s1255_s11 + $0x28] sm:$0xff] }
  0x45   :  { %v922_v37 = vpack.c.bf16 %v568_v35, %v567_v34  ;;  %v571_v40 = vld [vmem:[%s1255_s11 + $0x20] sm:$0xff] }
  0x46   :  { %860 = vmatpush1.bf16.msra.mxu0 %v859_v57  ;;  %v377_v57 = vld [vmem:[#allocation4 + $0x70] sm:$0xff]  ;;  %v928_v42 = vpack.c.bf16 %v572_v41, %v571_v40 }
  0x47   :  { %862 = vmatprep.subr.bf16.mxu0 %v861_v3 }
  0x4a   :  { %864 = vmatpush1.bf16.msra.mxu0 %v863_v6  ;;  %v904_v6 = vpack.c.bf16 %v478_v5, %v477_v4 }
  0x4b   :  { %897 = vmatprep.subr.bf16.mxu0 %v998_v1 }
  0xfd   :  { %v151_v59 = vpop.f32.mrb[0].mxu0 }
  0xfe   :  { %v152_v60 = vadd.f32 %v663_v58, %v151_v59  ;;  %v747_v61 = vpop.f32.mrb[1].mxu0  ;;  %v378_v58 = vld [vmem:[#allocation4 + $0x78] sm:$0xff] }
  0xff   :  { %v895_v59 = vpack.c.bf16 %v378_v58, %v377_v57  ;;  %v474_v61 = vld [vmem:[%s1253_s9 + $0x8] sm:$0xff] }
 0x100   :  { %v155_v62 = vmax.f32 %v152_v60, 0.0  ;;  %v473_v60 = vld [vmem:[%s1253_s9] sm:$0xff] }
 0x101   :  { %v898_v63 = vpack.c.bf16 %v474_v61, %v473_v60 }
 0x102   :  { %765 = vmatmul.mubr.msk.f32.vlgmr.msra.gmra.mrb[0].mxu1 %vm171_vm2, %v155_v62  ;;  %v475_v62 = vld [vmem:[%s1253_s9 + $0x10] sm:$0xff] }
 0x103   :  { %868 = vmatpush3.bf16.msra.mxu1 %v867_v14  ;;  %v901_v3 = vpack.c.bf16 %v476_v2, %v475_v62  ;;  %v484_v14 = vld [vmem:[%s1253_s9 + $0x58] sm:$0xff] }
 0x104   :  { %870 = vmatprep.subr.bf16.mxu1 %v869_v15  ;;  %v913_v15 = vpack.c.bf16 %v484_v14, %v483_v13 }
 0x107   :  { %872 = vmatpush3.bf16.msra.mxu1 %v871_v20  ;;  %v286_v20 = vsub.s32 1, %v281_v17 }
 0x108   :  { %874 = vmatprep.subr.bf16.mxu1 %v873_v21  ;;  %v283_v21 = vrot.slane %v278_v19, %v282_v18 }
 0x109   :  { %v287_v22 = vrot.slane %v278_v19, %v286_v20 }
 0x10b   :  { %876 = vmatpush3.bf16.msra.mxu1 %v875_v26 }
 0x10c   :  { %878 = vmatprep.subr.bf16.mxu1 %v877_v27 }
 0x10f   :  { %880 = vmatpush3.bf16.msra.mxu1 %v879_v32  ;;  %v487_v32 = vld [vmem:[%s1253_s9 + $0x70] sm:$0xff] }
 0x110   :  { %882 = vmatprep.subr.bf16.mxu1 %v881_v33 }
 0x113   :  { %884 = vmatpush3.bf16.msra.mxu1 %v883_v38  ;;  %v570_v38 = vld [vmem:[%s1255_s11 + $0x18] sm:$0xff] }
 0x114   :  { %886 = vmatprep.subr.bf16.mxu1 %v885_v39  ;;  %v925_v39 = vpack.c.bf16 %v570_v38, %v569_v36 }
 0x117   :  { %888 = vmatpush3.bf16.msra.mxu1 %v887_v44  ;;  %v667_v44 = vld [vmem:[%s1252_s8] ss:$0 sm:$0xff] }
 0x118   :  { %890 = vmatprep.subr.bf16.mxu1 %v889_v45 }
 0x11b   :  { %892 = vmatpush3.bf16.msra.mxu1 %v891_v53 }
 0x11c   :  { %894 = vmatprep.subr.bf16.mxu1 %v893_v56  ;;  %v669_v56 = vld [vmem:[%s1256_s12] ss:$0 sm:$0xff] }
 0x11f   :  { %896 = vmatpush3.bf16.msra.mxu1 %v895_v59 }
 0x120   :  { %921 = vmatprep.subr.bf16.mxu1 %v998_v1 }
 0x1d5   :  { %v241_v47 = vpop.f32.mrb[0].mxu1 }
 0x1d6   :  { %v242_v48 = vadd.f32 %v665_v46, %v241_v47  ;;  %v766_v49 = vpop.f32.mrb[1].mxu1 }
 0x1d7   :  { %v573_v49 = vld [vmem:[%s1255_s11 + $0x30] sm:$0xff] }
 0x1d8   :  { %v245_v50 = vmax.f32 %v242_v48, 0.0 }
 0x1da   :  { %355 = vmatmul.mubr.f32.vlgmr.msra.gmra.mrb[2].mxu0 %v245_v50  ;;  %v574_v50 = vld [vmem:[%s1255_s11 + $0x38] sm:$0xff] }
 0x1db   :  { %799 = vmatprep.mubr.msk.f32.mxu0 %vm997_vm0, %v996_v0  ;;  %899 = vmatpush3.bf16.msra.mxu0 %v898_v63  ;;  %v931_v51 = vpack.c.bf16 %v574_v50, %v573_v49 }
 0x1dc   :  { %900 = vmatprep.subr.bf16.mxu0 %v998_v1 }
 0x1df   :  { %902 = vmatpush3.bf16.msra.mxu0 %v901_v3 }
 0x1e0   :  { %903 = vmatprep.subr.bf16.mxu0 %v998_v1 }
 0x1e3   :  { %905 = vmatpush3.bf16.msra.mxu0 %v904_v6 }
 0x1e4   :  { %906 = vmatprep.subr.bf16.mxu0 %v998_v1 }
 0x1e7   :  { %908 = vmatpush3.bf16.msra.mxu0 %v907_v9 }
 0x1e8   :  { %909 = vmatprep.subr.bf16.mxu0 %v998_v1 }
 0x1eb   :  { %911 = vmatpush3.bf16.msra.mxu0 %v910_v12 }
 0x1ec   :  { %912 = vmatprep.subr.bf16.mxu0 %v998_v1 }
 0x1ef   :  { %914 = vmatpush3.bf16.msra.mxu0 %v913_v15 }
 0x1f0   :  { %915 = vmatprep.subr.bf16.mxu0 %v998_v1 }
 0x1f3   :  { %917 = vmatpush3.bf16.msra.mxu0 %v916_v31 }
 0x1f4   :  { %918 = vmatprep.subr.bf16.mxu0 %v998_v1 }
 0x2ad   :  { %v356_v23 = vpop.f32.mrb[2].mxu0 }
 0x2ae   :  { %v357_v24 = vadd.f32 %v356_v23, %v283_v21  ;;  %v358_v25 = vpop.f32.mrb[3].mxu0 }
 0x2af   :  { %v359_v26 = vadd.f32 %v358_v25, %v287_v22 }
 0x2b0   :  { %v361_v28 = vmax.f32 %v357_v24, 0.0 }
 0x2b1   :  { %v362_v27 = vmax.f32 %v359_v26, 0.0 }
 0x2b3   :  { %466 = vmatprep.mubr.f32.mxu1 %v362_v27 }
 0x2b4   :  { %467 = vmatmul.mubr.f32.vlgmr.msra.gmra.mrb[2].mxu1 %v361_v28 }
 0x2b5   :  { %818 = vmatprep.mubr.msk.f32.mxu1 %vm997_vm0, %v996_v0  ;;  %v488_v0 = vld [vmem:[%s1253_s9 + $0x78] sm:$0xff]  ;;  %923 = vmatpush3.bf16.msra.mxu1 %v922_v37 }
 0x2b6   :  { %v919_v33 = vpack.c.bf16 %v488_v0, %v487_v32  ;;  %924 = vmatprep.subr.bf16.mxu1 %v998_v1 }
 0x2b8   :  { %920 = vmatpush3.bf16.msra.mxu0 %v919_v33 }
 0x2b9   :  { %926 = vmatpush3.bf16.msra.mxu1 %v925_v39 }
 0x2ba   :  { %927 = vmatprep.subr.bf16.mxu1 %v998_v1 }
 0x2bd   :  { %929 = vmatpush3.bf16.msra.mxu1 %v928_v42 }
 0x2be   :  { %930 = vmatprep.subr.bf16.mxu1 %v998_v1  ;;  %v668_v1 = vld [vmem:[%s1254_s10] ss:$0 sm:$0xff] }
 0x2c1   :  { %932 = vmatpush3.bf16.msra.mxu1 %v931_v51 }
 0x387   :  { %v714_v43 = vpop.f32.mrb[2].mxu1 }
 0x388   :  { %v715_v45 = vpop.f32.mrb[3].mxu1 }
 0x389   :  { %v716_v46 = vadd.f32 %v715_v45, %v714_v43 }
 0x38b   :  { %v469_v47 = vadd.f32 %v716_v46, %v667_v44 }
 0x38d   :  { %v472_v48 = vmax.f32 %v469_v47, 0.0 }
 0x38f   :  { %800 = vmatmul.mubr.f32.vlgmr.msra.gmra.mrb[4].mxu0 %v472_v48 }
 0x462   :  { %v562_v52 = vpop.f32.mrb[4].mxu0 }
 0x463   :  { %v563_v53 = vadd.f32 %v668_v1, %v562_v52  ;;  %v801_v54 = vpop.f32.mrb[5].mxu0 }
 0x465   :  { %v566_v55 = vmax.f32 %v563_v53, 0.0 }
 0x467   :  { %819 = vmatmul.mubr.msk.f32.vlgmr.msra.gmra.mrb[4].mxu1 %vm171_vm2, %v566_v55 }
 0x53a   :  { %v651_v57 = vpop.f32.mrb[4].mxu1 }
 0x53b   :  { %v652_v58 = vadd.f32 %v669_v56, %v651_v57  ;;  %v820_v59 = vpop.f32.mrb[5].mxu1 }
 0x53d   :  { %656 = vst.msk [vmem:[%s1257_s13] sm:$0xff] %vm655_vm3, %v652_v58 }
 0x53e   :  { %661 = vsyncpa [#allocation3], 1 }
 0x53f   :  { %662 = vsyncpa [#allocation5], 1 }

</bundles_post_ra>
